<compile_context>
chip_gen: v6e
topology: v6e:2x2x1
jax: 0.10.0
libtpu: 0.0.40
codegen_flags: <defaults>
</compile_context>

<pallas_src>
import numpy as np
import jax
import jax.numpy as jnp
from jax.experimental import pallas as pl
from jax.experimental.pallas import tpu as pltpu

# ----------------------------- hyperparameters ------------------------------
SRC_VOCAB = 50
EMBED = 32
NUM_LAYERS = 2
HEADS = 4
HEAD_DIM = EMBED // HEADS          # 8
FWD_EXP = 4
HIDDEN = FWD_EXP * EMBED           # 128 (lane-dense FFN intermediate)
MAX_LEN = 16
N = 2                              # batch
SEQ = 8                            # sequence length
NSEQ = N * SEQ                     # 16 rows processed in one shot
LN_EPS = 1e-5
SCALE = 1.0 / float(np.sqrt(EMBED))

# ------------------------- packed parameter slab layout ----------------------
# One f32 (SLAB_ROWS, 128) slab -> a single DMA instead of 13 tiny padded refs.
_W1T_R = 0      # rows [  0, 32): w1.T                  (EMBED, HIDDEN)
_W2T_R = 32     # rows [ 32,160): w2.T                  (HIDDEN, EMBED) in cols [0,EMBED)
_WOT_R = 160    # rows [160,192): wo.T                  (EMBED, EMBED)  in cols [0,EMBED)
_QKV_R = 192    # rows [192,200): [wq.T*SCALE|wk.T|wv.T] (HEAD_DIM, 3*HEAD_DIM)
_VEC_R = 200    # rows 200..206 : bo, g1, b1, g2, b2, bf2 (cols [0,EMBED)), bf1 (cols [0,HIDDEN))
SLAB_ROWS = 208


# ------------------------------- Pallas kernel ------------------------------
def encoder_kernel(xf_ref, xh_ref, bias_ref, slab_ref, o_ref):
    """Full encoder forward for the whole (N*SEQ)-row batch in one step.

    xf_ref:   (NSEQ, EMBED)            embeddings, token-major (residual stream)
    xh_ref:   (HEADS*NSEQ, HEAD_DIM)   same embeddings, head-major (QKV source)
    bias_ref: (NSEQ, NSEQ)             additive -1e20 bias (key mask + cross-batch block)
    slab_ref: (SLAB_ROWS, 128)         packed parameters
    o_ref:    (NSEQ, EMBED)            encoder output
    """
    x = xf_ref[...]                                                  # (16, 32)
    bias = bias_ref[...]                                             # (16, 16)

    # ---- parameters: static slices of the packed slab (no extra DMAs) ----
    w1t = slab_ref[_W1T_R:_W1T_R + EMBED, :]                         # (32, 128)
    w2t = slab_ref[_W2T_R:_W2T_R + HIDDEN, 0:EMBED]                  # (128, 32)
    wot = slab_ref[_WOT_R:_WOT_R + EMBED, 0:EMBED]                   # (32, 32)
    wqkv = slab_ref[_QKV_R:_QKV_R + HEAD_DIM, 0:3 * HEAD_DIM]        # (8, 24)
    bo = slab_ref[_VEC_R + 0:_VEC_R + 1, 0:EMBED]
    g1 = slab_ref[_VEC_R + 1:_VEC_R + 2, 0:EMBED]
    b1 = slab_ref[_VEC_R + 2:_VEC_R + 3, 0:EMBED]
    g2 = slab_ref[_VEC_R + 3:_VEC_R + 4, 0:EMBED]
    b2 = slab_ref[_VEC_R + 4:_VEC_R + 5, 0:EMBED]
    bf2 = slab_ref[_VEC_R + 5:_VEC_R + 6, 0:EMBED]
    bf1 = slab_ref[_VEC_R + 6:_VEC_R + 7, :]                         # (1, 128)

    # ---- fused Q/K/V projection: one MXU push on head-major activations ----
    qkv = jnp.dot(xh_ref[...], wqkv, preferred_element_type=jnp.float32)  # (64, 24)
    qkv = qkv.reshape(HEADS, NSEQ, 3 * HEAD_DIM)                     # leading-dim split (free)
    q3 = qkv[:, :, 0:HEAD_DIM]                                       # SCALE folded into wq
    k3 = qkv[:, :, HEAD_DIM:2 * HEAD_DIM]
    v3 = qkv[:, :, 2 * HEAD_DIM:3 * HEAD_DIM]

    # ---- batched-over-heads attention on all N*SEQ rows -------------------
    # bias = -1e20 on masked keys and on cross-batch (query,key) pairs, 0 otherwise.
    e = jax.lax.dot_general(q3, k3, (((2,), (2,)), ((0,), (0,))),
                            preferred_element_type=jnp.float32)      # (H, 16, 16)
    e = e + bias                                                     # broadcast over heads
    e = e - jnp.max(e, axis=-1, keepdims=True)
    p = jnp.exp(e)
    p = p * pl.reciprocal(jnp.sum(p, axis=-1, keepdims=True), approx=True)
    o3 = jax.lax.dot_general(p, v3, (((2,), (1,)), ((0,), (0,))),
                             preferred_element_type=jnp.float32)     # (H, 16, 8)

    # single lane-axis concat + one output-projection matmul
    attn = jnp.concatenate([o3[h] for h in range(HEADS)], axis=1)    # (16, 32)
    attn = jnp.dot(attn, wot, preferred_element_type=jnp.float32) + bo

    # ---- residual + LayerNorm 1 ----
    y = attn + x
    m1 = jnp.mean(y, axis=-1, keepdims=True)
    c1 = y - m1
    r1 = jax.lax.rsqrt(jnp.mean(c1 * c1, axis=-1, keepdims=True) + LN_EPS)
    x1 = c1 * r1 * g1 + b1

    # ---- feed forward (hidden dim 128 -> lane-dense intermediate) ----
    h1 = jnp.dot(x1, w1t, preferred_element_type=jnp.float32) + bf1  # (16, 128)
    h1 = jnp.maximum(h1, 0.0)
    ff = jnp.dot(h1, w2t, preferred_element_type=jnp.float32) + bf2  # (16, 32)

    # ---- residual + LayerNorm 2 ----
    y2 = ff + x1
    m2 = jnp.mean(y2, axis=-1, keepdims=True)
    c2 = y2 - m2
    r2 = jax.lax.rsqrt(jnp.mean(c2 * c2, axis=-1, keepdims=True) + LN_EPS)
    o_ref[...] = c2 * r2 * g2 + b2


# ------------------------------ Encoder wrapper ------------------------------
def encoder_forward(tokens, mask, params):
    # Dead-layer elimination: the torch layer loop feeds every layer the
    # embedding output and keeps only the last layer's result.
    p = params["layers"][-1]

    # ---- embedding gather + positional add in XLA (16 rows; effectively free) ----
    x = params["word_emb"][tokens] + params["pos_emb"][:SEQ][None, :, :]   # (N, SEQ, EMBED)
    x = x.astype(jnp.float32)
    x_flat = x.reshape(NSEQ, EMBED)
    # head-major copy for the fused Q/K/V projection (no transposes in-kernel)
    x_heads = (x.reshape(N, SEQ, HEADS, HEAD_DIM)
                 .transpose(2, 0, 1, 3)
                 .reshape(HEADS * NSEQ, HEAD_DIM))                          # (64, 8)

    # ---- additive attention bias: key-padding mask + cross-batch blocking ----
    key_bias = jnp.where(mask == 0, jnp.float32(-1e20), jnp.float32(0.0)).reshape(NSEQ)
    row_b = jnp.arange(NSEQ) // SEQ
    same_batch = row_b[:, None] == row_b[None, :]
    bias = jnp.where(same_batch, key_bias[None, :], jnp.float32(-1e20))    # (16, 16)

    # ---- pack every parameter into one lane-dense (208, 128) slab ----
    wqkv = jnp.concatenate([p["wq"].T * SCALE, p["wk"].T, p["wv"].T], axis=1)  # (8, 24)
    slab = jnp.zeros((SLAB_ROWS, 128), jnp.float32)
    slab = slab.at[_W1T_R:_W1T_R + EMBED, :].set(p["w1"].T)
    slab = slab.at[_W2T_R:_W2T_R + HIDDEN, 0:EMBED].set(p["w2"].T)
    slab = slab.at[_WOT_R:_WOT_R + EMBED, 0:EMBED].set(p["wo"].T)
    slab = slab.at[_QKV_R:_QKV_R + HEAD_DIM, 0:3 * HEAD_DIM].set(wqkv)
    slab = slab.at[_VEC_R + 0, 0:EMBED].set(p["bo"][0])
    slab = slab.at[_VEC_R + 1, 0:EMBED].set(p["g1"][0])
    slab = slab.at[_VEC_R + 2, 0:EMBED].set(p["b1"][0])
    slab = slab.at[_VEC_R + 3, 0:EMBED].set(p["g2"][0])
    slab = slab.at[_VEC_R + 4, 0:EMBED].set(p["b2"][0])
    slab = slab.at[_VEC_R + 5, 0:EMBED].set(p["bf2"][0])
    slab = slab.at[_VEC_R + 6, :].set(p["bf1"][0])

    vmem = pl.BlockSpec(memory_space=pltpu.MemorySpace.VMEM)
    out2d = pl.pallas_call(
        encoder_kernel,
        out_shape=jax.ShapeDtypeStruct((NSEQ, EMBED), jnp.float32),
        in_specs=[vmem, vmem, vmem, vmem],
        out_specs=vmem,
    )(x_flat, x_heads, bias, slab)
    return out2d.reshape(N, SEQ, EMBED)


# ---------------------------- pure-JAX reference -----------------------------
def _layernorm(x, g, b):
    m = jnp.mean(x, axis=-1, keepdims=True)
    v = jnp.mean((x - m) ** 2, axis=-1, keepdims=True)
    return (x - m) / jnp.sqrt(v + LN_EPS) * g + b


def encoder_reference(tokens, mask, params):
    hp = jax.lax.Precision.HIGHEST
    word = params["word_emb"][tokens]
    pos = params["pos_emb"][jnp.arange(SEQ)][None, :, :]
    x = (word + pos).reshape(N * SEQ, EMBED).astype(jnp.float32)
    out = x
    for p in params["layers"]:                 # faithful torch loop: only last survives
        xh = x.reshape(N, SEQ, HEADS, HEAD_DIM)
        v = jnp.einsum("nlhd,od->nlho", xh, p["wv"], precision=hp)
        k = jnp.einsum("nlhd,od->nlho", xh, p["wk"], precision=hp)
        q = jnp.einsum("nlhd,od->nlho", xh, p["wq"], precision=hp)
        energy = jnp.einsum("nqhd,nkhd->nhqk", q, k, precision=hp)
        energy = jnp.where(mask[:, None, None, :] == 0, -1e20, energy)
        att = jax.nn.softmax(energy / jnp.sqrt(jnp.float32(EMBED)), axis=3)
        o = jnp.einsum("nhqk,nkhd->nqhd", att, v, precision=hp).reshape(N * SEQ, EMBED)
        o = jnp.einsum("te,oe->to", o, p["wo"], precision=hp) + p["bo"]
        x1 = _layernorm(o + x, p["g1"], p["b1"])
        h = jax.nn.relu(jnp.einsum("te,oe->to", x1, p["w1"], precision=hp) + p["bf1"])
        ff = jnp.einsum("th,oh->to", h, p["w2"], precision=hp) + p["bf2"]
        out = _layernorm(ff + x1, p["g2"], p["b2"])
    return out.reshape(N, SEQ, EMBED)


# ------------------------------ parameter init -------------------------------
def init_params(key):
    def linear_w(k, out_dim, in_dim):
        bound = 1.0 / np.sqrt(in_dim)
        return jax.random.uniform(k, (out_dim, in_dim), jnp.float32, -bound, bound)

    def linear_b(k, out_dim, in_dim):
        bound = 1.0 / np.sqrt(in_dim)
        return jax.random.uniform(k, (1, out_dim), jnp.float32, -bound, bound)

    keys = jax.random.split(key, 2 + NUM_LAYERS)
    params = {
        "word_emb": jax.random.normal(keys[0], (SRC_VOCAB, EMBED), jnp.float32),
        "pos_emb": jax.random.normal(keys[1], (MAX_LEN, EMBED), jnp.float32),
        "layers": [],
    }
    for li in range(NUM_LAYERS):
        lk = jax.random.split(keys[2 + li], 10)
        params["layers"].append({
            "wv": linear_w(lk[0], HEAD_DIM, HEAD_DIM),
            "wk": linear_w(lk[1], HEAD_DIM, HEAD_DIM),
            "wq": linear_w(lk[2], HEAD_DIM, HEAD_DIM),
            "wo": linear_w(lk[3], EMBED, EMBED),
            "bo": linear_b(lk[4], EMBED, EMBED),
            "g1": jnp.ones((1, EMBED), jnp.float32),
            "b1": jnp.zeros((1, EMBED), jnp.float32),
            "g2": jnp.ones((1, EMBED), jnp.float32),
            "b2": jnp.zeros((1, EMBED), jnp.float32),
            "w1": linear_w(lk[5], HIDDEN, EMBED),
            "bf1": linear_b(lk[6], HIDDEN, EMBED),
            "w2": linear_w(lk[7], EMBED, HIDDEN),
            "bf2": linear_b(lk[8], EMBED, HIDDEN),
        })
    return params


# ----------------------------------- main ------------------------------------
if __name__ == "__main__":
    root = jax.random.PRNGKey(0)
    k_tok, k_par = jax.random.split(root)

    tokens = jax.random.randint(k_tok, (N, SEQ), 0, SRC_VOCAB, dtype=jnp.int32)
    mask = jnp.ones((N, SEQ), dtype=jnp.int32).at[1, SEQ - 1].set(0)  # mask one key
    params = init_params(k_par)

    fwd = jax.jit(encoder_forward)
    out = jax.block_until_ready(fwd(tokens, mask, params))

    ref = jax.block_until_ready(encoder_reference(tokens, mask, params))
    assert out.shape == (N, SEQ, EMBED)
    assert np.all(np.isfinite(np.asarray(out)))
    np.testing.assert_allclose(np.asarray(out), np.asarray(ref), rtol=1e-2, atol=1e-2)

    print("KERNEL_OK")
</pallas_src>

<mosaic_0001>
module attributes {stable_mosaic.version = 11 : i64} {
  func.func @encoder_kernel(%arg0: memref<16x32xf32, #tpu.memory_space<vmem>>, %arg1: memref<64x8xf32, #tpu.memory_space<vmem>>, %arg2: memref<16x16xf32, #tpu.memory_space<vmem>>, %arg3: memref<208x128xf32, #tpu.memory_space<vmem>>, %arg4: memref<16x32xf32, #tpu.memory_space<vmem>>) attributes {dimension_semantics = [], scalar_prefetch = 0 : i64, scratch_operands = 0 : i64, tpu.core_type = #tpu.core_type<tc>} {
    %c0 = arith.constant 0 : index
    %c0_0 = arith.constant 0 : index
    %0 = vector.load %arg0[%c0, %c0_0] : memref<16x32xf32, #tpu.memory_space<vmem>>, vector<16x32xf32>
    %c0_1 = arith.constant 0 : index
    %c0_2 = arith.constant 0 : index
    %1 = vector.load %arg2[%c0_1, %c0_2] : memref<16x16xf32, #tpu.memory_space<vmem>>, vector<16x16xf32>
    %c0_3 = arith.constant 0 : index
    %c0_4 = arith.constant 0 : index
    %2 = vector.load %arg3[%c0_3, %c0_4] : memref<208x128xf32, #tpu.memory_space<vmem>>, vector<32x128xf32>
    %c32 = arith.constant 32 : index
    %c0_5 = arith.constant 0 : index
    %3 = vector.load %arg3[%c32, %c0_5] : memref<208x128xf32, #tpu.memory_space<vmem>>, vector<128x32xf32>
    %c160 = arith.constant 160 : index
    %c0_6 = arith.constant 0 : index
    %4 = vector.load %arg3[%c160, %c0_6] : memref<208x128xf32, #tpu.memory_space<vmem>>, vector<32x32xf32>
    %c192 = arith.constant 192 : index
    %c0_7 = arith.constant 0 : index
    %5 = vector.load %arg3[%c192, %c0_7] : memref<208x128xf32, #tpu.memory_space<vmem>>, vector<8x24xf32>
    %c200 = arith.constant 200 : index
    %c0_8 = arith.constant 0 : index
    %6 = vector.load %arg3[%c200, %c0_8] : memref<208x128xf32, #tpu.memory_space<vmem>>, vector<1x32xf32>
    %c201 = arith.constant 201 : index
    %c0_9 = arith.constant 0 : index
    %7 = vector.load %arg3[%c201, %c0_9] : memref<208x128xf32, #tpu.memory_space<vmem>>, vector<1x32xf32>
    %c202 = arith.constant 202 : index
    %c0_10 = arith.constant 0 : index
    %8 = vector.load %arg3[%c202, %c0_10] : memref<208x128xf32, #tpu.memory_space<vmem>>, vector<1x32xf32>
    %c203 = arith.constant 203 : index
    %c0_11 = arith.constant 0 : index
    %9 = vector.load %arg3[%c203, %c0_11] : memref<208x128xf32, #tpu.memory_space<vmem>>, vector<1x32xf32>
    %c204 = arith.constant 204 : index
    %c0_12 = arith.constant 0 : index
    %10 = vector.load %arg3[%c204, %c0_12] : memref<208x128xf32, #tpu.memory_space<vmem>>, vector<1x32xf32>
    %c205 = arith.constant 205 : index
    %c0_13 = arith.constant 0 : index
    %11 = vector.load %arg3[%c205, %c0_13] : memref<208x128xf32, #tpu.memory_space<vmem>>, vector<1x32xf32>
    %c206 = arith.constant 206 : index
    %c0_14 = arith.constant 0 : index
    %12 = vector.load %arg3[%c206, %c0_14] : memref<208x128xf32, #tpu.memory_space<vmem>>, vector<1x128xf32>
    %c0_15 = arith.constant 0 : index
    %c0_16 = arith.constant 0 : index
    %13 = vector.load %arg1[%c0_15, %c0_16] : memref<64x8xf32, #tpu.memory_space<vmem>>, vector<64x8xf32>
    %cst = arith.constant dense<0.000000e+00> : vector<64x24xf32>
    %14 = tpu.matmul %13, %5, %cst {dimension_numbers = #tpu.dot_dimension_numbers<[1], [0], [0], [1], [0, 0, 1, 1], [], []>} : vector<64x8xf32>, vector<8x24xf32>, vector<64x24xf32> -> vector<64x24xf32>
    %15 = vector.shape_cast %14 : vector<64x24xf32> to vector<4x16x24xf32>
    %16 = vector.extract_strided_slice %15 {offsets = [0, 0, 0], sizes = [4, 16, 8], strides = [1, 1, 1]} : vector<4x16x24xf32> to vector<4x16x8xf32>
    %17 = vector.extract_strided_slice %15 {offsets = [0, 0, 8], sizes = [4, 16, 8], strides = [1, 1, 1]} : vector<4x16x24xf32> to vector<4x16x8xf32>
    %18 = vector.extract_strided_slice %15 {offsets = [0, 0, 16], sizes = [4, 16, 8], strides = [1, 1, 1]} : vector<4x16x24xf32> to vector<4x16x8xf32>
    %cst_17 = arith.constant dense<0.000000e+00> : vector<4x16x16xf32>
    %19 = tpu.matmul %16, %17, %cst_17 {dimension_numbers = #tpu.dot_dimension_numbers<[2], [2], [1], [1], [0, 0, 0, 1, 1, 1], [0], [0]>} : vector<4x16x8xf32>, vector<4x16x8xf32>, vector<4x16x16xf32> -> vector<4x16x16xf32>
    %20 = vector.shape_cast %1 : vector<16x16xf32> to vector<1x16x16xf32>
    %21 = vector.broadcast %20 : vector<1x16x16xf32> to vector<4x16x16xf32>
    %22 = arith.addf %19, %21 : vector<4x16x16xf32>
    %cst_18 = arith.constant dense<0xFF800000> : vector<4x16xf32>
    %23 = vector.multi_reduction <maximumf>, %22, %cst_18 [2] : vector<4x16x16xf32> to vector<4x16xf32>
    %24 = vector.shape_cast %23 : vector<4x16xf32> to vector<4x16x1xf32>
    %25 = vector.broadcast %24 : vector<4x16x1xf32> to vector<4x16x16xf32>
    %26 = arith.subf %22, %25 : vector<4x16x16xf32>
    %27 = math.exp %26 : vector<4x16x16xf32>
    %cst_19 = arith.constant dense<0.000000e+00> : vector<4x16xf32>
    %28 = vector.multi_reduction <add>, %27, %cst_19 [2] : vector<4x16x16xf32> to vector<4x16xf32>
    %29 = vector.shape_cast %28 : vector<4x16xf32> to vector<4x16x1xf32>
    %30 = tpu.reciprocal %29 {approx = true} : vector<4x16x1xf32> -> vector<4x16x1xf32>
    %31 = vector.broadcast %30 : vector<4x16x1xf32> to vector<4x16x16xf32>
    %32 = arith.mulf %27, %31 : vector<4x16x16xf32>
    %cst_20 = arith.constant dense<0.000000e+00> : vector<4x16x8xf32>
    %33 = tpu.matmul %32, %18, %cst_20 {dimension_numbers = #tpu.dot_dimension_numbers<[2], [1], [1], [2], [0, 0, 0, 1, 1, 2], [0], [0]>} : vector<4x16x16xf32>, vector<4x16x8xf32>, vector<4x16x8xf32> -> vector<4x16x8xf32>
    %34 = vector.extract_strided_slice %33 {offsets = [0, 0, 0], sizes = [1, 16, 8], strides = [1, 1, 1]} : vector<4x16x8xf32> to vector<1x16x8xf32>
    %35 = vector.shape_cast %34 : vector<1x16x8xf32> to vector<16x8xf32>
    %36 = vector.extract_strided_slice %33 {offsets = [1, 0, 0], sizes = [1, 16, 8], strides = [1, 1, 1]} : vector<4x16x8xf32> to vector<1x16x8xf32>
    %37 = vector.shape_cast %36 : vector<1x16x8xf32> to vector<16x8xf32>
    %38 = vector.extract_strided_slice %33 {offsets = [2, 0, 0], sizes = [1, 16, 8], strides = [1, 1, 1]} : vector<4x16x8xf32> to vector<1x16x8xf32>
    %39 = vector.shape_cast %38 : vector<1x16x8xf32> to vector<16x8xf32>
    %40 = vector.extract_strided_slice %33 {offsets = [3, 0, 0], sizes = [1, 16, 8], strides = [1, 1, 1]} : vector<4x16x8xf32> to vector<1x16x8xf32>
    %41 = vector.shape_cast %40 : vector<1x16x8xf32> to vector<16x8xf32>
    %42 = tpu.concatenate %35, %37, %39, %41 in 1 : vector<16x8xf32>, vector<16x8xf32>, vector<16x8xf32>, vector<16x8xf32> -> vector<16x32xf32>
    %cst_21 = arith.constant dense<0.000000e+00> : vector<16x32xf32>
    %43 = tpu.matmul %42, %4, %cst_21 {dimension_numbers = #tpu.dot_dimension_numbers<[1], [0], [0], [1], [0, 0, 1, 1], [], []>} : vector<16x32xf32>, vector<32x32xf32>, vector<16x32xf32> -> vector<16x32xf32>
    %44 = vector.broadcast %6 : vector<1x32xf32> to vector<16x32xf32>
    %45 = arith.addf %43, %44 : vector<16x32xf32>
    %46 = arith.addf %45, %0 : vector<16x32xf32>
    %cst_22 = arith.constant dense<0.000000e+00> : vector<16xf32>
    %47 = vector.multi_reduction <add>, %46, %cst_22 [1] : vector<16x32xf32> to vector<16xf32>
    %48 = vector.shape_cast %47 : vector<16xf32> to vector<16x1xf32>
    %cst_23 = arith.constant 3.200000e+01 : f32
    %49 = vector.broadcast %cst_23 : f32 to vector<16x1xf32>
    %50 = arith.divf %48, %49 : vector<16x1xf32>
    %51 = vector.broadcast %50 : vector<16x1xf32> to vector<16x32xf32>
    %52 = arith.subf %46, %51 : vector<16x32xf32>
    %53 = arith.mulf %52, %52 : vector<16x32xf32>
    %cst_24 = arith.constant dense<0.000000e+00> : vector<16xf32>
    %54 = vector.multi_reduction <add>, %53, %cst_24 [1] : vector<16x32xf32> to vector<16xf32>
    %55 = vector.shape_cast %54 : vector<16xf32> to vector<16x1xf32>
    %cst_25 = arith.constant 3.200000e+01 : f32
    %56 = vector.broadcast %cst_25 : f32 to vector<16x1xf32>
    %57 = arith.divf %55, %56 : vector<16x1xf32>
    %cst_26 = arith.constant 9.99999974E-6 : f32
    %58 = vector.broadcast %cst_26 : f32 to vector<16x1xf32>
    %59 = arith.addf %57, %58 : vector<16x1xf32>
    %60 = math.rsqrt %59 : vector<16x1xf32>
    %61 = vector.broadcast %60 : vector<16x1xf32> to vector<16x32xf32>
    %62 = arith.mulf %52, %61 : vector<16x32xf32>
    %63 = vector.broadcast %7 : vector<1x32xf32> to vector<16x32xf32>
    %64 = arith.mulf %62, %63 : vector<16x32xf32>
    %65 = vector.broadcast %8 : vector<1x32xf32> to vector<16x32xf32>
    %66 = arith.addf %64, %65 : vector<16x32xf32>
    %cst_27 = arith.constant dense<0.000000e+00> : vector<16x128xf32>
    %67 = tpu.matmul %66, %2, %cst_27 {dimension_numbers = #tpu.dot_dimension_numbers<[1], [0], [0], [1], [0, 0, 1, 1], [], []>} : vector<16x32xf32>, vector<32x128xf32>, vector<16x128xf32> -> vector<16x128xf32>
    %68 = vector.broadcast %12 : vector<1x128xf32> to vector<16x128xf32>
    %69 = arith.addf %67, %68 : vector<16x128xf32>
    %cst_28 = arith.constant 0.000000e+00 : f32
    %70 = vector.broadcast %cst_28 : f32 to vector<16x128xf32>
    %71 = arith.maximumf %69, %70 : vector<16x128xf32>
    %cst_29 = arith.constant dense<0.000000e+00> : vector<16x32xf32>
    %72 = tpu.matmul %71, %3, %cst_29 {dimension_numbers = #tpu.dot_dimension_numbers<[1], [0], [0], [1], [0, 0, 1, 1], [], []>} : vector<16x128xf32>, vector<128x32xf32>, vector<16x32xf32> -> vector<16x32xf32>
    %73 = vector.broadcast %11 : vector<1x32xf32> to vector<16x32xf32>
    %74 = arith.addf %72, %73 : vector<16x32xf32>
    %75 = arith.addf %74, %66 : vector<16x32xf32>
    %cst_30 = arith.constant dense<0.000000e+00> : vector<16xf32>
    %76 = vector.multi_reduction <add>, %75, %cst_30 [1] : vector<16x32xf32> to vector<16xf32>
    %77 = vector.shape_cast %76 : vector<16xf32> to vector<16x1xf32>
    %cst_31 = arith.constant 3.200000e+01 : f32
    %78 = vector.broadcast %cst_31 : f32 to vector<16x1xf32>
    %79 = arith.divf %77, %78 : vector<16x1xf32>
    %80 = vector.broadcast %79 : vector<16x1xf32> to vector<16x32xf32>
    %81 = arith.subf %75, %80 : vector<16x32xf32>
    %82 = arith.mulf %81, %81 : vector<16x32xf32>
    %cst_32 = arith.constant dense<0.000000e+00> : vector<16xf32>
    %83 = vector.multi_reduction <add>, %82, %cst_32 [1] : vector<16x32xf32> to vector<16xf32>
    %84 = vector.shape_cast %83 : vector<16xf32> to vector<16x1xf32>
    %cst_33 = arith.constant 3.200000e+01 : f32
    %85 = vector.broadcast %cst_33 : f32 to vector<16x1xf32>
    %86 = arith.divf %84, %85 : vector<16x1xf32>
    %cst_34 = arith.constant 9.99999974E-6 : f32
    %87 = vector.broadcast %cst_34 : f32 to vector<16x1xf32>
    %88 = arith.addf %86, %87 : vector<16x1xf32>
    %89 = math.rsqrt %88 : vector<16x1xf32>
    %90 = vector.broadcast %89 : vector<16x1xf32> to vector<16x32xf32>
    %91 = arith.mulf %81, %90 : vector<16x32xf32>
    %92 = vector.broadcast %9 : vector<1x32xf32> to vector<16x32xf32>
    %93 = arith.mulf %91, %92 : vector<16x32xf32>
    %94 = vector.broadcast %10 : vector<1x32xf32> to vector<16x32xf32>
    %95 = arith.addf %93, %94 : vector<16x32xf32>
    %c0_35 = arith.constant 0 : index
    %c0_36 = arith.constant 0 : index
    %96 = vector.load %arg4[%c0_35, %c0_36] : memref<16x32xf32, #tpu.memory_space<vmem>>, vector<16x32xf32>
    tpu.vector_store %arg4[%c0_35, %c0_36], %95 {strides = array<i32>} : memref<16x32xf32, #tpu.memory_space<vmem>>, vector<16x32xf32>,
    return
  }
}

</mosaic_0001>

<bundles_post_ra>
// kernel: encoder_forward.1
= control target key start
LH: loop header
LB: loop body
LE: loop exit
PB: predicated region body
PF: predicated region fallthrough
CT: control target
= control target key end

     0   :  { %vm62_vm0 = vcmask 64512   ;;  %s1991_s0 = inlined_call_operand.vmem [shape: f32[16,32], index: 0, kind: input, shape index: {}]   ;;  %s1992_s1 = inlined_call_operand.vmem [shape: f32[64,8], index: 1, kind: input, shape index: {}]   ;;  %s1993_s2 = inlined_call_operand.vmem [shape: f32[16,16], index: 2, kind: input, shape index: {}]   ;;  %s1994_s3 = inlined_call_operand.vmem [shape: f32[208,128], index: 3, kind: input, shape index: {}]   ;;  %s1995_s4 = inlined_call_operand.hbm [shape: f32[16,32], index: 4, kind: output, shape index: {}]  }
   0x1   :  { %v46_v0 = vld [vmem:[%s1994_s3 + $0xc0] sm:$0xff]  ;;  %v55_v2 = vld [vmem:[%s1992_s1 + $0x8] sm:$0xff]  ;;  %v56_v3 = vld [vmem:[%s1992_s1 + $0x10] sm:$0xff] }
   0x2   :  { %v54_v1 = vld [vmem:[%s1992_s1] sm:$0xff]  ;;  %1481 = vmatprep.subr.mxu0 %v46_v0 }
   0x3   :  { %1483 = vmatprep.mubr.msk.f32.mxu0 %vm62_vm0, %v54_v1  ;;  %1482 = vmatpush3.msra.mxu0 %v46_v0 }
   0x4   :  { %1484 = vmatmul.mubr.msk.f32.vlgmr.msra.gmra.mxu0 %vm62_vm0, %v55_v2 }
   0x5   :  { %9 = vsyncpa [#allocation3], 0  ;;  %1486 = vmatprep.mubr.msk.f32.mxu0 %vm62_vm0, %v56_v3  ;;  %v57_v4 = vld [vmem:[%s1992_s1 + $0x18] sm:$0xff]  ;;  %v58_v5 = vld [vmem:[%s1992_s1 + $0x20] sm:$0xff]  ;;  %s1677_s7 = smov 120   ;;  %vm548_vm1 = vcmask 130048  }
   0x6   :  { %v59_v6 = vld [vmem:[%s1992_s1 + $0x28] sm:$0xff]  ;;  %v60_v7 = vld [vmem:[%s1992_s1 + $0x30] sm:$0xff]  ;;  %v61_v8 = vld [vmem:[%s1992_s1 + $0x38] sm:$0xff]  ;;  %s1679_s11 = smov 8   ;;  %s1680_s20 = smov 16   ;;  %vm1013_vm2 = vcmask 195584  }
   0x7   :  { %v21_v25 = vld [vmem:[%s1993_s2 + $0x8] sm:$0xff]  ;;  %v20_v27 = vld [vmem:[%s1993_s2] sm:$0xff]  ;;  %s1678_s2 = smov 112   ;;  %s1681_s21 = smov 24   ;;  %vm1020_vm3 = vcmask 261120  }
   0x8   :  { %1487 = vmatmul.mubr.msk.f32.gmra.mxu0 %vm62_vm0, %v57_v4  ;;  %s1682_s24 = smov [#allocation2]  }
   0x9   :  { %1489 = vmatprep.mubr.msk.f32.mxu0 %vm62_vm0, %v58_v5  ;;  %s1356_s25 = sshll.u32 %s1682_s24, 4  ;;  %s1357_s25 = int_to_ptr.vmem [resolvable:$true] %s1356_s25 }
   0xa   :  { %s1655_s26 = scalar_lea.vmem %s1357_s25, 256  ;;  %p1660_p1 = scmp.lt.s32.totalorder %s1357_s25, %s1357_s25 }
   0xb   :  { %p1656_p0 = scmp.ne.s32.totalorder %s1357_s25, %s1655_s26  ;;  %p1661_p2 = scmp.lt.s32.totalorder %s1655_s26, %s1655_s26 }
   0xc   :  { %1490 = vmatmul.mubr.msk.f32.gmra.mxu0 %vm62_vm0, %v59_v6 }
   0xd   :  { %1492 = vmatprep.mubr.msk.f32.mxu0 %vm62_vm0, %v60_v7  ;;  %p1662_p3 = por %p1661_p2, %p1660_p1 }
   0xf   :  { %p1663_p4 = pnand %p1662_p3, %p1656_p0 }
  0x10   :  { %1493 = vmatmul.mubr.msk.f32.gmra.mxu0 %vm62_vm0, %v61_v8 }
  0xc4   :  { %v1744_v9 = vpop.f32.mrf.mxu0 }
  0xc5   :  { %196 = vrot.lane.b32.xlu0 %v1744_v9, %s1677_s7 }
  0xc6   :  { %v1747_v10 = vpop.f32.mrf.mxu0 }
  0xc7   :  { %1499 = vmatprep.mubr.msk.f32.mxu0 %vm62_vm0, %v1747_v10 }
  0xc8   :  { %v1751_v11 = vpop.f32.mrf.mxu0 }
  0xc9   :  { %194 = vrot.lane.b32.xlu0 %v1747_v10, %s1677_s7  ;;  %285 = vrot.lane.b32.xlu1 %v1751_v11, %s1677_s7 }
  0xca   :  { %v1755_v12 = vpop.f32.mrf.mxu0 }
  0xcc   :  { %v1757_v13 = vpop.f32.mrf.mxu0 }
  0xcd   :  { %283 = vrot.lane.b32.xlu1 %v1755_v12, %s1677_s7  ;;  %374 = vrot.lane.b32.xlu0 %v1757_v13, %s1677_s7 }
  0xce   :  { %v1761_v14 = vpop.f32.mrf.mxu0 }
  0xd0   :  { %v1763_v15 = vpop.f32.mrf.mxu0 }
  0xd1   :  { %463 = vrot.lane.b32.xlu1 %v1763_v15, %s1677_s7  ;;  %372 = vrot.lane.b32.xlu0 %v1761_v14, %s1677_s7 }
  0xd2   :  { %v1767_v16 = vpop.f32.mrf.mxu0 }
  0xd3   :  { %1520 = vmatprep.mubr.msk.f32.mxu1 %vm62_vm0, %v1767_v16 }
  0xd5   :  { %461 = vrot.lane.b32.xlu1 %v1767_v16, %s1677_s7 }
 0x137   :  { %v197_v17 = vpop.permute.xlu0 %196 }
 0x138   :  { %1495 = vmatprep.subr.msk.mxu0 %vm62_vm0, %v197_v17 }
 0x139   :  { %1496 = vmatpush3.xpose.msk.msra.mxu0 %vm62_vm0, %v197_v17 }
 0x13b   :  { %v195_v18 = vpop.permute.xlu0 %194  ;;  %v286_v19 = vpop.permute.xlu1 %285 }
 0x13c   :  { %1497 = vmatprep.subr.msk.mxu0 %vm62_vm0, %v195_v18 }
 0x13d   :  { %1498 = vmatpush3.xpose.msk.msra.mxu0 %vm62_vm0, %v195_v18 }
 0x13e   :  { %1502 = vmatprep.subr.msk.mxu0 %vm62_vm0, %v286_v19 }
 0x13f   :  { %v284_v20 = vpop.permute.xlu1 %283  ;;  %v375_v22 = vpop.permute.xlu0 %374 }
 0x140   :  { %1500 = vmatmul.mubr.msk.f32.vlgmr.msra.gmra.mxu0 %vm62_vm0, %v1744_v9 }
 0x141   :  { %1503 = vmatpush3.xpose.msk.msra.mxu0 %vm62_vm0, %v286_v19  ;;  %1506 = vmatprep.mubr.msk.f32.mxu0 %vm62_vm0, %v1755_v12 }
 0x142   :  { %1504 = vmatprep.subr.msk.mxu0 %vm62_vm0, %v284_v20 }
 0x143   :  { %v464_v21 = vpop.permute.xlu1 %463  ;;  %v373_v24 = vpop.permute.xlu0 %372 }
 0x144   :  { %1516 = vmatprep.subr.msk.mxu1 %vm62_vm0, %v464_v21 }
 0x145   :  { %1505 = vmatpush3.xpose.msk.msra.mxu0 %vm62_vm0, %v284_v20  ;;  %1517 = vmatpush3.xpose.msk.msra.mxu1 %vm62_vm0, %v464_v21 }
 0x146   :  { %1509 = vmatprep.subr.msk.mxu0 %vm62_vm0, %v375_v22 }
 0x147   :  { %v462_v23 = vpop.permute.xlu1 %461 }
 0x148   :  { %1507 = vmatmul.mubr.msk.f32.vlgmr.msra.gmra.mxu0 %vm62_vm0, %v1751_v11  ;;  %1518 = vmatprep.subr.msk.mxu1 %vm62_vm0, %v462_v23 }
 0x149   :  { %1510 = vmatpush3.xpose.msk.msra.mxu0 %vm62_vm0, %v375_v22  ;;  %1513 = vmatprep.mubr.msk.f32.mxu0 %vm62_vm0, %v1761_v14 }
 0x14a   :  { %1519 = vmatpush3.xpose.msk.msra.mxu1 %vm62_vm0, %v462_v23  ;;  %1511 = vmatprep.subr.msk.mxu0 %vm62_vm0, %v373_v24 }
 0x14d   :  { %1521 = vmatmul.mubr.msk.f32.vlgmr.msra.gmra.mxu1 %vm62_vm0, %v1763_v15  ;;  %1512 = vmatpush3.xpose.msk.msra.mxu0 %vm62_vm0, %v373_v24 }
 0x150   :  { %1514 = vmatmul.mubr.msk.f32.vlgmr.msra.gmra.mxu0 %vm62_vm0, %v1757_v13 }
 0x200   :  { %v1501_v26 = vpop.f32.mrf.mxu0 }
 0x201   :  { %v278_v28 = vadd.f32 %v1501_v26, %v21_v25 }
 0x202   :  { %v272_v29 = vpop.f32.mrf.mxu0 }
 0x203   :  { %v273_v30 = vadd.f32 %v272_v29, %v20_v27  ;;  %v552_v31 = vsel %vm548_vm1, %v278_v28, -inf }
 0x204   :  { %553 = vmax.xlane.f32.xlu1 %v552_v31 }
 0x205   :  { %v549_v32 = vsel %vm548_vm1, %v273_v30, -inf }
 0x206   :  { %550 = vmax.xlane.f32.xlu0 %v549_v32 }
 0x208   :  { %v1508_v33 = vpop.f32.mrf.mxu0 }
 0x209   :  { %v367_v34 = vadd.f32 %v1508_v33, %v21_v25 }
 0x20a   :  { %v361_v35 = vpop.f32.mrf.mxu0 }
 0x20b   :  { %v362_v36 = vadd.f32 %v361_v35, %v20_v27  ;;  %v558_v37 = vsel %vm548_vm1, %v367_v34, -inf }
 0x20c   :  { %559 = vmax.xlane.f32.xlu0 %v558_v37 }
 0x20d   :  { %v1522_v38 = vpop.f32.mrf.mxu1  ;;  %v555_v39 = vsel %vm548_vm1, %v362_v36, -inf }
 0x20e   :  { %v545_v44 = vadd.f32 %v1522_v38, %v21_v25 }
 0x20f   :  { %v539_v42 = vpop.f32.mrf.mxu1 }
 0x210   :  { %v1515_v40 = vpop.f32.mrf.mxu0  ;;  %556 = vmax.xlane.f32.xlu0 %v555_v39  ;;  %v540_v47 = vadd.f32 %v539_v42, %v20_v27  ;;  %v570_v49 = vsel %vm548_vm1, %v545_v44, -inf }
 0x211   :  { %v456_v41 = vadd.f32 %v1515_v40, %v21_v25 }
 0x212   :  { %v450_v43 = vpop.f32.mrf.mxu0  ;;  %v567_v50 = vsel %vm548_vm1, %v540_v47, -inf }
 0x213   :  { %v451_v45 = vadd.f32 %v450_v43, %v20_v27  ;;  %v564_v46 = vsel %vm548_vm1, %v456_v41, -inf }
 0x214   :  { %565 = vmax.xlane.f32.xlu0 %v564_v46 }
 0x215   :  { %v561_v48 = vsel %vm548_vm1, %v451_v45, -inf }
 0x216   :  { %562 = vmax.xlane.f32.xlu1 %v561_v48 }
 0x218   :  { %571 = vmax.xlane.f32.xlu0 %v570_v49 }
 0x21a   :  { %568 = vmax.xlane.f32.xlu1 %v567_v50 }
 0x22b   :  { %639 = vrot.lane.b32.xlu1 %v1744_v9, %s1678_s2 }
 0x22e   :  { %637 = vrot.lane.b32.xlu0 %v1747_v10, %s1678_s2 }
 0x22f   :  { %726 = vrot.lane.b32.xlu1 %v1751_v11, %s1678_s2 }
 0x232   :  { %813 = vrot.lane.b32.xlu0 %v1757_v13, %s1678_s2 }
 0x233   :  { %724 = vrot.lane.b32.xlu1 %v1755_v12, %s1678_s2 }
 0x237   :  { %900 = vrot.lane.b32.xlu1 %v1763_v15, %s1678_s2 }
 0x28d   :  { %v554_v51 = vpop.xlane.xlu1 %553 }
 0x28e   :  { %v574_v52 = vsub.f32 %v278_v28, %v554_v51 }
 0x28f   :  { %v551_v53 = vpop.xlane.xlu0 %550 }
 0x290   :  { %v583_v54 = vmul.f32 1.442695, %v574_v52  ;;  %v573_v55 = vsub.f32 %v273_v30, %v551_v53 }
 0x292   :  { %1615 = vpow2.f32 %v583_v54  ;;  %v581_v56 = vmul.f32 1.442695, %v573_v55 }
 0x294   :  { %1617 = vpow2.f32 %v581_v56 }
 0x295   :  { %v560_v57 = vpop.xlane.xlu0 %559 }
 0x296   :  { %v576_v58 = vsub.f32 %v367_v34, %v560_v57 }
 0x298   :  { %v587_v59 = vmul.f32 1.442695, %v576_v58 }
 0x299   :  { %v557_v60 = vpop.xlane.xlu0 %556 }
 0x29a   :  { %1619 = vpow2.f32 %v587_v59  ;;  %v575_v61 = vsub.f32 %v362_v36, %v557_v60 }
 0x29c   :  { %v585_v62 = vmul.f32 1.442695, %v575_v61 }
 0x29d   :  { %v566_v63 = vpop.xlane.xlu0 %565 }
 0x29e   :  { %1621 = vpow2.f32 %v585_v62  ;;  %v578_v1 = vsub.f32 %v456_v41, %v566_v63  ;;  %v45_v63 = vld [vmem:[%s1994_s3 + $0xb8] sm:$0xff] }
 0x29f   :  { %v1826_v0 = vpop.eup %1615  ;;  %v563_v2 = vpop.xlane.xlu1 %562 }
 0x2a0   :  { %v600_v3 = vsel %vm548_vm1, %v1826_v0, 0.0  ;;  %v577_v6 = vsub.f32 %v451_v45, %v563_v2  ;;  %v591_v9 = vmul.f32 1.442695, %v578_v1  ;;  %v43_v1 = vld [vmem:[%s1994_s3 + $0xa8] sm:$0xff]  ;;  %v42_v2 = vld [vmem:[%s1994_s3 + $0xa0] sm:$0xff] }
 0x2a1   :  { %v1618_v4 = vpop.eup %1617  ;;  %v572_v5 = vpop.xlane.xlu0 %571  ;;  %601 = vadd.xlane.f32.xlu0 %v600_v3 }
 0x2a2   :  { %v580_v7 = vsub.f32 %v545_v44, %v572_v5  ;;  %v597_v8 = vsel %vm548_vm1, %v1618_v4, 0.0  ;;  %v589_v15 = vmul.f32 1.442695, %v577_v6 }
 0x2a3   :  { %598 = vadd.xlane.f32.xlu1 %v597_v8  ;;  %v569_v10 = vpop.xlane.xlu1 %568 }
 0x2a4   :  { %v595_v11 = vmul.f32 1.442695, %v580_v7  ;;  %v579_v12 = vsub.f32 %v540_v47, %v569_v10 }
 0x2a5   :  { %v638_v13 = vpop.permute.xlu0 %637 }
 0x2a6   :  { %1623 = vpow2.f32 %v595_v11  ;;  %v593_v17 = vmul.f32 1.442695, %v579_v12 }
 0x2a7   :  { %v1831_v18 = vpop.eup %1619  ;;  %1625 = vpow2.f32 %v591_v9  ;;  %v640_v19 = vpop.permute.xlu1 %639 }
 0x2a8   :  { %1627 = vpow2.f32 %v593_v17  ;;  %1523 = vmatprep.subr.mxu0 %v640_v19  ;;  %v606_v20 = vsel %vm548_vm1, %v1831_v18, 0.0 }
 0x2a9   :  { %v814_v21 = vpop.permute.xlu0 %813  ;;  %607 = vadd.xlane.f32.xlu0 %v606_v20  ;;  %1524 = vmatpush3.msra.mxu0 %v640_v19  ;;  %1629 = vpow2.f32 %v589_v15 }
 0x2aa   :  { %1525 = vmatprep.subr.mxu0 %v638_v13  ;;  %1537 = vmatprep.subr.mxu1 %v814_v21 }
 0x2ab   :  { %v1622_v22 = vpop.eup %1621  ;;  %1526 = vmatpush3.msra.mxu0 %v638_v13  ;;  %1538 = vmatpush3.msra.mxu1 %v814_v21  ;;  %v727_v23 = vpop.permute.xlu1 %726  ;;  %v1399_v21 = vld [vmem:[%s1994_s3 + $0xc8] ss:$0 sm:$0xff] }
 0x2ac   :  { %1530 = vmatprep.subr.mxu0 %v727_v23  ;;  %v603_v24 = vsel %vm548_vm1, %v1622_v22, 0.0 }
 0x2ad   :  { %604 = vadd.xlane.f32.xlu1 %v603_v24 }
 0x2af   :  { %v725_v33 = vpop.permute.xlu1 %724 }
 0x2b3   :  { %v1624_v25 = vpop.eup %1623  ;;  %v901_v34 = vpop.permute.xlu1 %900 }
 0x2b4   :  { %v1836_v26 = vpop.eup %1625  ;;  %v618_v27 = vsel %vm548_vm1, %v1624_v25, 0.0 }
 0x2b5   :  { %v1628_v28 = vpop.eup %1627  ;;  %619 = vadd.xlane.f32.xlu0 %v618_v27  ;;  %v612_v31 = vsel %vm548_vm1, %v1836_v26, 0.0 }
 0x2b6   :  { %v615_v29 = vsel %vm548_vm1, %v1628_v28, 0.0  ;;  %v1630_v30 = vpop.eup %1629 }
 0x2b7   :  { %616 = vadd.xlane.f32.xlu1 %v615_v29  ;;  %v609_v32 = vsel %vm548_vm1, %v1630_v30, 0.0 }
 0x2b9   :  { %613 = vadd.xlane.f32.xlu0 %v612_v31 }
 0x2bb   :  { %610 = vadd.xlane.f32.xlu1 %v609_v32 }
 0x2cc   :  { %898 = vrot.lane.b32.xlu1 %v1767_v16, %s1678_s2 }
 0x2cf   :  { %811 = vrot.lane.b32.xlu0 %v1761_v14, %s1678_s2 }
 0x32a   :  { %v602_v35 = vpop.xlane.xlu0 %601 }
 0x32b   :  { %1631 = vrcp.f32 %v602_v35 }
 0x32c   :  { %v599_v36 = vpop.xlane.xlu1 %598 }
 0x32d   :  { %1633 = vrcp.f32 %v599_v36 }
 0x332   :  { %v608_v37 = vpop.xlane.xlu0 %607 }
 0x333   :  { %1635 = vrcp.f32 %v608_v37 }
 0x336   :  { %v605_v38 = vpop.xlane.xlu1 %604 }
 0x337   :  { %1637 = vrcp.f32 %v605_v38 }
 0x338   :  { %v1632_v39 = vpop.eup %1631 }
 0x339   :  { %v630_v42 = vmul.f32 %v1632_v39, %v1826_v0  ;;  %v44_v0 = vld [vmem:[%s1994_s3 + $0xb0] sm:$0xff] }
 0x33a   :  { %v1634_v40 = vpop.eup %1633 }
 0x33b   :  { %v629_v41 = vmul.f32 %v1634_v40, %v1618_v4 }
 0x33d   :  { %1527 = vmatprep.mubr.msk.f32.mxu0 %vm548_vm1, %v629_v41 }
 0x33e   :  { %v620_v16 = vpop.xlane.xlu0 %619  ;;  %1528 = vmatmul.mubr.msk.f32.vlgmr.msra.gmra.mxu0 %vm548_vm1, %v630_v42  ;;  %v25_v42 = vld [vmem:[%s1994_s3 + $0x18] sm:$0xff] }
 0x33f   :  { %1531 = vmatpush3.msra.mxu0 %v727_v23  ;;  %1639 = vrcp.f32 %v620_v16  ;;  %v19_v23 = vld [vmem:[%s1991_s0 + $0x8] sm:$0xff]  ;;  %v24_v16 = vld [vmem:[%s1994_s3 + $0x10] sm:$0xff] }
 0x340   :  { %1532 = vmatprep.subr.mxu0 %v725_v33  ;;  %v617_v14 = vpop.xlane.xlu1 %616  ;;  %v1636_v44 = vpop.eup %1635 }
 0x341   :  { %1533 = vmatpush3.msra.mxu0 %v725_v33  ;;  %1641 = vrcp.f32 %v617_v14  ;;  %v632_v49 = vmul.f32 %v1636_v44, %v1831_v18  ;;  %v23_v14 = vld [vmem:[%s1994_s3 + $0x8] sm:$0xff]  ;;  %v41_v44 = vld [vmem:[%s1994_s3 + $0x98] sm:$0xff] }
 0x342   :  { %1544 = vmatprep.subr.mxu0 %v901_v34  ;;  %v614_v43 = vpop.xlane.xlu0 %613 }
 0x343   :  { %1643 = vrcp.f32 %v614_v43  ;;  %v22_v43 = vld [vmem:[%s1994_s3] sm:$0xff] }
 0x344   :  { %v1638_v45 = vpop.eup %1637  ;;  %v611_v46 = vpop.xlane.xlu1 %610 }
 0x345   :  { %1645 = vrcp.f32 %v611_v46  ;;  %v631_v47 = vmul.f32 %v1638_v45, %v1622_v22  ;;  %v40_v45 = vld [vmem:[%s1994_s3 + $0x90] sm:$0xff]  ;;  %v39_v46 = vld [vmem:[%s1994_s3 + $0x88] sm:$0xff] }
 0x346   :  { %v812_v48 = vpop.permute.xlu0 %811 }
 0x347   :  { %1534 = vmatprep.mubr.msk.f32.mxu0 %vm548_vm1, %v631_v47  ;;  %1539 = vmatprep.subr.mxu1 %v812_v48  ;;  %v38_v47 = vld [vmem:[%s1994_s3 + $0x80] sm:$0xff] }
 0x348   :  { %1535 = vmatmul.mubr.msk.f32.vlgmr.msra.gmra.mxu0 %vm548_vm1, %v632_v49  ;;  %1540 = vmatpush3.msra.mxu1 %v812_v48  ;;  %v899_v50 = vpop.permute.xlu1 %898  ;;  %v37_v48 = vld [vmem:[%s1994_s3 + $0x78] sm:$0xff]  ;;  %v36_v49 = vld [vmem:[%s1994_s3 + $0x70] sm:$0xff] }
 0x349   :  { %1545 = vmatpush3.msra.mxu0 %v901_v34  ;;  %1551 = vmatprep.subr.mxu1 %v45_v63 }
 0x34a   :  { %1546 = vmatprep.subr.mxu0 %v899_v50 }
 0x34b   :  { %1547 = vmatpush3.msra.mxu0 %v899_v50  ;;  %v35_v50 = vld [vmem:[%s1994_s3 + $0x68] sm:$0xff] }
 0x34c   :  { %v1640_v51 = vpop.eup %1639  ;;  %1562 = vmatprep.subr.mxu0 %v25_v42 }
 0x34d   :  { %v636_v54 = vmul.f32 %v1640_v51, %v1624_v25  ;;  %v34_v51 = vld [vmem:[%s1994_s3 + $0x60] sm:$0xff] }
 0x34e   :  { %v1642_v52 = vpop.eup %1641 }
 0x34f   :  { %v635_v53 = vmul.f32 %v1642_v52, %v1628_v28  ;;  %v33_v52 = vld [vmem:[%s1994_s3 + $0x58] sm:$0xff] }
 0x350   :  { %v1644_v55 = vpop.eup %1643 }
 0x351   :  { %1548 = vmatprep.mubr.msk.f32.mxu0 %vm548_vm1, %v635_v53  ;;  %v634_v58 = vmul.f32 %v1644_v55, %v1836_v26  ;;  %v18_v26 = vld [vmem:[%s1991_s0] sm:$0xff]  ;;  %v32_v53 = vld [vmem:[%s1994_s3 + $0x50] sm:$0xff] }
 0x352   :  { %v1646_v56 = vpop.eup %1645  ;;  %1549 = vmatmul.mubr.msk.f32.vlgmr.msra.gmra.mxu0 %vm548_vm1, %v636_v54  ;;  %v31_v54 = vld [vmem:[%s1994_s3 + $0x48] sm:$0xff]  ;;  %v30_v55 = vld [vmem:[%s1994_s3 + $0x40] sm:$0xff] }
 0x353   :  { %v633_v57 = vmul.f32 %v1646_v56, %v1630_v30  ;;  %1563 = vmatpush3.msra.mxu0 %v25_v42 }
 0x354   :  { %1564 = vmatprep.subr.mxu0 %v24_v16 }
 0x355   :  { %1541 = vmatprep.mubr.msk.f32.mxu1 %vm548_vm1, %v633_v57  ;;  %1565 = vmatpush3.msra.mxu0 %v24_v16 }
 0x356   :  { %1542 = vmatmul.mubr.msk.f32.vlgmr.msra.gmra.mxu1 %vm548_vm1, %v634_v58  ;;  %1566 = vmatprep.subr.mxu0 %v23_v14 }
 0x357   :  { %1552 = vmatpush3.msra.mxu1 %v45_v63  ;;  %1567 = vmatpush3.msra.mxu0 %v23_v14  ;;  %v1402_v63 = vld [vmem:[%s1994_s3 + $0xc9] ss:$0 sm:$0xff] }
 0x358   :  { %1553 = vmatprep.subr.mxu1 %v44_v0  ;;  %1568 = vmatprep.subr.mxu0 %v22_v43 }
 0x359   :  { %1554 = vmatpush3.msra.mxu1 %v44_v0  ;;  %1569 = vmatpush3.msra.mxu0 %v22_v43 }
 0x35a   :  { %1555 = vmatprep.subr.mxu1 %v43_v1 }
 0x35b   :  { %1556 = vmatpush3.msra.mxu1 %v43_v1  ;;  %v1403_v1 = vld [vmem:[%s1994_s3 + $0xca] ss:$0 sm:$0xff] }
 0x35c   :  { %1557 = vmatprep.subr.mxu1 %v42_v2 }
 0x35d   :  { %1558 = vmatpush3.msra.mxu1 %v42_v2 }
 0x35e   :  { %1573 = vmatprep.subr.mxu1 %v41_v44 }
 0x3fe   :  { %v1529_v59 = vpop.f32.mrf.mxu0 }
 0x400   :  { %v715_v60 = vpop.f32.mrf.mxu0 }
 0x408   :  { %v1536_v61 = vpop.f32.mrf.mxu0 }
 0x409   :  { %989 = vrot.lane.b32.xlu1 %v1536_v61, %s1679_s11 }
 0x40a   :  { %v802_v62 = vpop.f32.mrf.mxu0 }
 0x40b   :  { %987 = vrot.lane.b32.xlu0 %v802_v62, %s1679_s11 }
 0x412   :  { %v1550_v4 = vpop.f32.mrf.mxu0 }
 0x414   :  { %v976_v6 = vpop.f32.mrf.mxu0 }
 0x416   :  { %v1543_v3 = vpop.f32.mrf.mxu1 }
 0x417   :  { %997 = vrot.lane.b32.xlu1 %v1543_v3, %s1680_s20 }
 0x418   :  { %v889_v5 = vpop.f32.mrf.mxu1 }
 0x419   :  { %995 = vrot.lane.b32.xlu0 %v889_v5, %s1680_s20 }
 0x41b   :  { %1005 = vrot.lane.b32.xlu1 %v1550_v4, %s1681_s21 }
 0x41d   :  { %1003 = vrot.lane.b32.xlu0 %v976_v6, %s1681_s21 }
 0x47b   :  { %v990_v7 = vpop.permute.xlu1 %989 }
 0x47c   :  { %v1010_v13 = vsel %vm62_vm0, %v1529_v59, %v990_v7 }
 0x47d   :  { %v988_v8 = vpop.permute.xlu0 %987 }
 0x47e   :  { %v1009_v11 = vsel %vm62_vm0, %v715_v60, %v988_v8  ;;  %v29_v8 = vld [vmem:[%s1994_s3 + $0x38] sm:$0xff] }
 0x489   :  { %v998_v9 = vpop.permute.xlu1 %997 }
 0x48a   :  { %v1012_v18 = vsel %vm548_vm1, %v1010_v13, %v998_v9  ;;  %v28_v9 = vld [vmem:[%s1994_s3 + $0x30] sm:$0xff] }
 0x48b   :  { %v996_v10 = vpop.permute.xlu0 %995 }
 0x48c   :  { %v1011_v15 = vsel %vm548_vm1, %v1009_v11, %v996_v10  ;;  %v27_v10 = vld [vmem:[%s1994_s3 + $0x28] sm:$0xff]  ;;  %v26_v11 = vld [vmem:[%s1994_s3 + $0x20] sm:$0xff] }
 0x48d   :  { %v1006_v12 = vpop.permute.xlu1 %1005 }
 0x48e   :  { %v1015_v20 = vsel %vm1013_vm2, %v1012_v18, %v1006_v12  ;;  %v1404_v12 = vld [vmem:[%s1994_s3 + $0xce] ss:$0 sm:$0xff] }
 0x48f   :  { %v1004_v17 = vpop.permute.xlu0 %1003 }
 0x490   :  { %v1014_v19 = vsel %vm1013_vm2, %v1011_v15, %v1004_v17 }
 0x491   :  { %1559 = vmatprep.mubr.msk.f32.mxu1 %vm1020_vm3, %v1014_v19 }
 0x492   :  { %1560 = vmatmul.mubr.msk.f32.vlgmr.msra.gmra.mxu1 %vm1020_vm3, %v1015_v20 }
 0x493   :  { %1574 = vmatpush3.msra.mxu1 %v41_v44 }
 0x494   :  { %1575 = vmatprep.subr.mxu1 %v40_v45 }
 0x495   :  { %1576 = vmatpush3.msra.mxu1 %v40_v45  ;;  %v1408_v45 = vld [vmem:[%s1994_s3 + $0xcb] ss:$0 sm:$0xff] }
 0x496   :  { %1577 = vmatprep.subr.mxu1 %v39_v46 }
 0x497   :  { %1578 = vmatpush3.msra.mxu1 %v39_v46 }
 0x498   :  { %1579 = vmatprep.subr.mxu1 %v38_v47 }
 0x499   :  { %1580 = vmatpush3.msra.mxu1 %v38_v47 }
 0x49a   :  { %1581 = vmatprep.subr.mxu1 %v37_v48 }
 0x49b   :  { %1582 = vmatpush3.msra.mxu1 %v37_v48  ;;  %v1409_v48 = vld [vmem:[%s1994_s3 + $0xcc] ss:$0 sm:$0xff] }
 0x49c   :  { %1583 = vmatprep.subr.mxu1 %v36_v49 }
 0x49d   :  { %1584 = vmatpush3.msra.mxu1 %v36_v49 }
 0x49e   :  { %1585 = vmatprep.subr.mxu1 %v35_v50 }
 0x49f   :  { %1586 = vmatpush3.msra.mxu1 %v35_v50 }
 0x4a0   :  { %1587 = vmatprep.subr.mxu1 %v34_v51 }
 0x4a1   :  { %1588 = vmatpush3.msra.mxu1 %v34_v51 }
 0x4a2   :  { %1589 = vmatprep.subr.mxu1 %v33_v52 }
 0x4a3   :  { %1590 = vmatpush3.msra.mxu1 %v33_v52 }
 0x4a4   :  { %1591 = vmatprep.subr.mxu1 %v32_v53 }
 0x4a5   :  { %1592 = vmatpush3.msra.mxu1 %v32_v53 }
 0x4a6   :  { %1593 = vmatprep.subr.mxu1 %v31_v54 }
 0x4a7   :  { %1594 = vmatpush3.msra.mxu1 %v31_v54 }
 0x4a8   :  { %1595 = vmatprep.subr.mxu1 %v30_v55 }
 0x4a9   :  { %1596 = vmatpush3.msra.mxu1 %v30_v55 }
 0x4aa   :  { %1597 = vmatprep.subr.mxu1 %v29_v8 }
 0x4ab   :  { %1598 = vmatpush3.msra.mxu1 %v29_v8 }
 0x4ac   :  { %1599 = vmatprep.subr.mxu1 %v28_v9 }
 0x4ad   :  { %1600 = vmatpush3.msra.mxu1 %v28_v9 }
 0x4ae   :  { %1601 = vmatprep.subr.mxu1 %v27_v10 }
 0x4af   :  { %1602 = vmatpush3.msra.mxu1 %v27_v10 }
 0x4b0   :  { %1603 = vmatprep.subr.mxu1 %v26_v11 }
 0x4b1   :  { %1604 = vmatpush3.msra.mxu1 %v26_v11 }
 0x552   :  { %v1561_v22 = vpop.f32.mrf.mxu1 }
 0x553   :  { %v1099_v24 = vadd.f32 %v1561_v22, %v1399_v21 }
 0x554   :  { %v1093_v25 = vpop.f32.mrf.mxu1 }
 0x555   :  { %v1094_v27 = vadd.f32 %v1399_v21, %v1093_v25  ;;  %v1103_v28 = vadd.f32 %v1099_v24, %v19_v23  ;;  %v1407_v21 = vld [vmem:[%s1994_s3 + $0xcd] ss:$0 sm:$0xff] }
 0x557   :  { %v1107_v29 = vsel %vm1020_vm3, %v1103_v28, 0.0  ;;  %v1102_v30 = vadd.f32 %v1094_v27, %v18_v26 }
 0x558   :  { %1108 = vadd.xlane.f32.xlu1 %v1107_v29 }
 0x559   :  { %v1104_v31 = vsel %vm1020_vm3, %v1102_v30, 0.0 }
 0x55a   :  { %1105 = vadd.xlane.f32.xlu0 %v1104_v31 }
 0x5e1   :  { %v1109_v32 = vpop.xlane.xlu1 %1108 }
 0x5e2   :  { %v1112_v33 = vmul.f32 0.03125, %v1109_v32 }
 0x5e3   :  { %v1106_v34 = vpop.xlane.xlu0 %1105 }
 0x5e4   :  { %v1111_v35 = vmul.f32 0.03125, %v1106_v34  ;;  %v1889_v36 = vsub.f32 %v1103_v28, %v1112_v33 }
 0x5e6   :  { %v1891_v37 = vsub.f32 %v1102_v30, %v1111_v35  ;;  %v1116_v40 = vmul.f32 %v1889_v36, %v1889_v36 }
 0x5e8   :  { %v1115_v38 = vmul.f32 %v1891_v37, %v1891_v37  ;;  %v1120_v41 = vsel %vm1020_vm3, %v1116_v40, 0.0 }
 0x5ea   :  { %v1117_v39 = vsel %vm1020_vm3, %v1115_v38, 0.0 }
 0x5eb   :  { %1118 = vadd.xlane.f32.xlu0 %v1117_v39 }
 0x5ef   :  { %1121 = vadd.xlane.f32.xlu0 %v1120_v41 }
 0x674   :  { %v1119_v56 = vpop.xlane.xlu0 %1118 }
 0x675   :  { %v1123_v57 = vmul.f32 0.03125, %v1119_v56 }
 0x677   :  { %v1125_v58 = vadd.f32 1e-05, %v1123_v57 }
 0x678   :  { %v1122_v59 = vpop.xlane.xlu0 %1121 }
 0x679   :  { %1647 = vrsqrt.f32 %v1125_v58  ;;  %v1124_v60 = vmul.f32 0.03125, %v1122_v59 }
 0x67b   :  { %v1126_v61 = vadd.f32 1e-05, %v1124_v60 }
 0x67d   :  { %1649 = vrsqrt.f32 %v1126_v61 }
 0x686   :  { %v1648_v62 = vpop.eup %1647 }
 0x687   :  { %v1129_v0 = vmul.f32 %v1648_v62, %v1891_v37 }
 0x689   :  { %v1135_v2 = vmul.f32 %v1402_v63, %v1129_v0 }
 0x68a   :  { %v1650_v3 = vpop.eup %1649 }
 0x68b   :  { %v1130_v4 = vmul.f32 %v1650_v3, %v1889_v36  ;;  %v1141_v5 = vadd.f32 %v1403_v1, %v1135_v2 }
 0x68d   :  { %v1136_v6 = vmul.f32 %v1402_v63, %v1130_v4  ;;  %1570 = vmatprep.mubr.msk.f32.mxu0 %vm1020_vm3, %v1141_v5 }
 0x68f   :  { %v1142_v7 = vadd.f32 %v1403_v1, %v1136_v6 }
 0x691   :  { %1571 = vmatmul.mubr.msk.f32.vlgmr.msra.gmra.mxu0 %vm1020_vm3, %v1142_v7 }
 0x751   :  { %v1572_v13 = vpop.f32.mrf.mxu0 }
 0x752   :  { %v1225_v15 = vadd.f32 %v1572_v13, %v1404_v12 }
 0x753   :  { %v1219_v17 = vpop.f32.mrf.mxu0 }
 0x754   :  { %v1220_v18 = vadd.f32 %v1404_v12, %v1219_v17  ;;  %v1229_v20 = vmax.f32 %v1225_v15, 0.0 }
 0x756   :  { %v1228_v19 = vmax.f32 %v1220_v18, 0.0 }
 0x758   :  { %1605 = vmatprep.mubr.f32.mxu1 %v1228_v19 }
 0x759   :  { %1606 = vmatmul.mubr.f32.vlgmr.msra.gmra.mxu1 %v1229_v20 }
 0x819   :  { %v1607_v22 = vpop.f32.mrf.mxu1 }
 0x81a   :  { %v1306_v23 = vadd.f32 %v1607_v22, %v1407_v21 }
 0x81b   :  { %v1300_v24 = vpop.f32.mrf.mxu1 }
 0x81c   :  { %v1301_v25 = vadd.f32 %v1407_v21, %v1300_v24  ;;  %v1310_v26 = vadd.f32 %v1306_v23, %v1142_v7 }
 0x81e   :  { %v1314_v27 = vsel %vm1020_vm3, %v1310_v26, 0.0  ;;  %v1309_v28 = vadd.f32 %v1301_v25, %v1141_v5 }
 0x81f   :  { %1315 = vadd.xlane.f32.xlu0 %v1314_v27 }
 0x820   :  { %v1311_v29 = vsel %vm1020_vm3, %v1309_v28, 0.0 }
 0x821   :  { %1312 = vadd.xlane.f32.xlu1 %v1311_v29 }
 0x8a8   :  { %v1316_v30 = vpop.xlane.xlu0 %1315 }
 0x8a9   :  { %v1318_v31 = vmul.f32 0.03125, %v1316_v30 }
 0x8aa   :  { %v1313_v32 = vpop.xlane.xlu1 %1312 }
 0x8ab   :  { %v1320_v33 = vsub.f32 %v1310_v26, %v1318_v31  ;;  %v1317_v34 = vmul.f32 0.03125, %v1313_v32 }
 0x8ad   :  { %v1319_v35 = vsub.f32 %v1309_v28, %v1317_v34  ;;  %v1322_v36 = vmul.f32 %v1320_v33, %v1320_v33 }
 0x8af   :  { %v1326_v37 = vsel %vm1020_vm3, %v1322_v36, 0.0  ;;  %v1321_v38 = vmul.f32 %v1319_v35, %v1319_v35 }
 0x8b0   :  { %1327 = vadd.xlane.f32.xlu0 %v1326_v37 }
 0x8b1   :  { %v1323_v39 = vsel %vm1020_vm3, %v1321_v38, 0.0 }
 0x8b2   :  { %1324 = vadd.xlane.f32.xlu1 %v1323_v39 }
 0x939   :  { %v1328_v40 = vpop.xlane.xlu0 %1327 }
 0x93a   :  { %v1330_v41 = vmul.f32 0.03125, %v1328_v40 }
 0x93b   :  { %v1325_v42 = vpop.xlane.xlu1 %1324 }
 0x93c   :  { %v1332_v16 = vadd.f32 1e-05, %v1330_v41  ;;  %v1329_v14 = vmul.f32 0.03125, %v1325_v42 }
 0x93e   :  { %1651 = vrsqrt.f32 %v1332_v16  ;;  %v1331_v43 = vadd.f32 1e-05, %v1329_v14 }
 0x940   :  { %1653 = vrsqrt.f32 %v1331_v43 }
 0x94b   :  { %v1652_v44 = vpop.eup %1651 }
 0x94c   :  { %v1336_v46 = vmul.f32 %v1652_v44, %v1320_v33 }
 0x94d   :  { %v1654_v47 = vpop.eup %1653 }
 0x94e   :  { %v1335_v49 = vmul.f32 %v1654_v47, %v1319_v35  ;;  %v1342_v50 = vmul.f32 %v1408_v45, %v1336_v46 }
 0x950   :  { %v1341_v51 = vmul.f32 %v1408_v45, %v1335_v49  ;;  %v1348_v52 = vadd.f32 %v1409_v48, %v1342_v50 }
 0x952   :  { %v1347_v53 = vadd.f32 %v1409_v48, %v1341_v51  ;;  %1350 = vst.msk [vmem:[#allocation2 + $0x8] sm:$0xff] %vm1020_vm3, %v1348_v52 }
 0x954   :  { %1349 = vst.msk [vmem:[#allocation2] sm:$0xff] %vm1020_vm3, %v1347_v53 }
 0x955   :  { %1666 = shalt.err (!%p1663_p4)
}
 0x956   :  { %s1683_s3 = smov 128  }
 0x957   :  { %1362 = dma.vmem_to_hbm [thread:$0]  %s1357_s25, 256, %s1995_s4, [#allocation3], %s1683_s3, %s1683_s3, %s1679_s11  }
 0x958   :  { %1675 = dma.done.wait [#allocation3], 256  }
 0x959   :  { %1676 = vsyncadd [#allocation3], 4294967040 }
 0x95a   :  { %1366 = vsyncpa [#allocation3], 1 }

</bundles_post_ra>
